<compile_context>
chip_gen: v6e
topology: v6e:2x2x1
jax: 0.10.0
libtpu: 0.0.40
codegen_flags: <defaults>
</compile_context>

<pallas_src>
import jax
import jax.numpy as jnp
from jax.experimental import pallas as pl
from jax.experimental.pallas import tpu as pltpu


_SMALL_SINGLE_BLOCK_BYTES = 256 * 1024   # below this, one block is fine
_SMALL_RAGGED_FULL_BLOCK_BYTES = 4 << 20  # ragged tensors up to this: 1 block


def _add_mul_div_kernel(x_ref, o_ref):
    # ((x + 2) * 3) / 2, with /2 written as *0.5 (exact). Native dtype compute.
    x = x_ref[...]
    o_ref[...] = ((x + 2.0) * 3.0) * 0.5


def _gen_params():
    """Generation-aware (block_bytes, vmem_limit_bytes, min_blocks)."""
    block_bytes = 2 << 20      # safe default: 8 MiB total under v5e's 16 MiB
    vmem_limit = None
    min_blocks = 2             # keep some DMA/compute overlap on 1-TC chips
    try:
        kind = jax.devices()[0].device_kind.lower()
    except Exception:
        kind = ""
    if "v7" in kind:
        block_bytes = 8 << 20          # amortize per-step overhead vs 3.2 TB/s HBM
        vmem_limit = 40 << 20          # 2 bufs x (in+out) x 8 MiB = 32 MiB + headroom
        min_blocks = 4                 # 2 TensorCores: keep both streaming
    elif "v6" in kind or "trillium" in kind:
        block_bytes = 4 << 20          # 16 MiB budget < 32 MiB scoped default
    return block_bytes, vmem_limit, min_blocks


def _pick_lanes(n):
    """Widest lane count (multiple of 128) that divides n -> free reshape."""
    for cand in (2048, 1024, 512, 256, 128):
        if n % cand == 0:
            return cand
    return None


def _run_small(x2d, donate_input=False):
    """Single full-array block (no (8,128) divisibility requirement)."""
    kwargs = {}
    if donate_input:
        kwargs["input_output_aliases"] = {0: 0}
    return pl.pallas_call(
        _add_mul_div_kernel,
        out_shape=jax.ShapeDtypeStruct(x2d.shape, x2d.dtype),
        **kwargs,
    )(x2d)


def _run_2d(x2d, block_bytes, vmem_limit, min_blocks, donate_input=False):
    """Tiled elementwise kernel over a lane-dense (rows, lanes) slab."""
    rows, lanes = x2d.shape
    itemsize = jnp.dtype(x2d.dtype).itemsize
    row_bytes = lanes * itemsize
    total_bytes = rows * row_bytes

    if rows <= 8 or total_bytes <= _SMALL_SINGLE_BLOCK_BYTES:
        # tiny tensor: single full-array block (full dims -> no constraint)
        tile_rows = rows
    else:
        target_rows = max(8, block_bytes // row_bytes)
        tile_rows = min(target_rows, rows)
        if min_blocks > 1:
            # split into >= min_blocks so parallel axis shards across TCs
            tile_rows = min(tile_rows, max(8, rows // min_blocks))
        tile_rows = max(8, (tile_rows // 8) * 8)
        # a ragged final block (rows % tile_rows != 0) is masked by Pallas

    grid = (pl.cdiv(rows, tile_rows),)

    cp_kwargs = dict(dimension_semantics=("parallel",))
    if vmem_limit is not None:
        cp_kwargs["vmem_limit_bytes"] = vmem_limit

    call_kwargs = {}
    if donate_input:
        call_kwargs["input_output_aliases"] = {0: 0}

    return pl.pallas_call(
        _add_mul_div_kernel,
        out_shape=jax.ShapeDtypeStruct((rows, lanes), x2d.dtype),
        grid=grid,
        in_specs=[pl.BlockSpec((tile_rows, lanes), lambda i: (i, 0))],
        out_specs=pl.BlockSpec((tile_rows, lanes), lambda i: (i, 0)),
        compiler_params=pltpu.CompilerParams(**cp_kwargs),
        cost_estimate=pl.CostEstimate(
            flops=3 * rows * lanes,
            transcendentals=0,
            bytes_accessed=2 * total_bytes,
        ),
        **call_kwargs,
    )(x2d)


def pt_module_forward(x: jax.Array, donate_input: bool = False) -> jax.Array:
    orig_shape = x.shape
    if x.size == 0:
        return x

    # PyTorch's true-division yields float; for non-float inputs compute in f32.
    if not jnp.issubdtype(x.dtype, jnp.floating):
        x = x.astype(jnp.float32)

    n = x.size
    itemsize = jnp.dtype(x.dtype).itemsize
    block_bytes, vmem_limit, min_blocks = _gen_params()

    lanes = _pick_lanes(n)
    if lanes is not None:
        # zero-copy path: metadata-only reshape to a lane-dense slab
        x2d = jnp.reshape(x, (n // lanes, lanes))
        out2d = _run_2d(x2d, block_bytes, vmem_limit, min_blocks, donate_input)
        return jnp.reshape(out2d, orig_shape)

    if n * itemsize <= _SMALL_RAGGED_FULL_BLOCK_BYTES:
        # ragged but small: one full-array block, no pad/slice HBM round trips
        out = _run_small(jnp.reshape(x, (1, n)), donate_input)
        return jnp.reshape(out, orig_shape)

    # TODO(synk): very large tensors whose element count is not a multiple of
    # 128 still pay one pad + one slice HBM round trip; a masked-final-block
    # pipeline would remove it.
    lanes = 128
    rows = pl.cdiv(n, lanes)
    x_flat = jnp.pad(jnp.reshape(x, (-1,)), (0, rows * lanes - n))
    out2d = _run_2d(jnp.reshape(x_flat, (rows, lanes)),
                    block_bytes, vmem_limit, min_blocks, False)
    return jnp.reshape(jnp.reshape(out2d, (-1,))[:n], orig_shape)


if __name__ == "__main__":
    key = jax.random.PRNGKey(0)

    def ref(x):
        return ((x + 2.0) * 3.0) / 2.0

    # Primary check: module-shaped input (batch=2, channels=4, 16x16 spatial).
    x = jax.random.normal(key, (2, 4, 16, 16), dtype=jnp.float32)
    out = jax.block_until_ready(pt_module_forward(x))
    assert out.shape == x.shape and out.dtype == x.dtype
    assert jnp.allclose(out, ref(x), atol=1e-6, rtol=1e-6)

    # Tiled multi-block path (lane-dense, >256 KiB -> grid > 1).
    x2 = jax.random.normal(jax.random.PRNGKey(1), (4, 8, 32, 128), dtype=jnp.float32)
    out2 = jax.block_until_ready(pt_module_forward(x2))
    assert jnp.allclose(out2, ref(x2), atol=1e-6, rtol=1e-6)

    # Ragged path (element count not a multiple of 128) -> single full block.
    x3 = jax.random.normal(jax.random.PRNGKey(2), (3, 7, 5), dtype=jnp.float32)
    out3 = jax.block_until_ready(pt_module_forward(x3))
    assert out3.shape == x3.shape
    assert jnp.allclose(out3, ref(x3), atol=1e-6, rtol=1e-6)

    print("KERNEL_OK")
</pallas_src>

<mosaic_0001>
module attributes {stable_mosaic.version = 11 : i64} {
  func.func @_add_mul_div_kernel(%arg0: i32, %arg1: memref<1x2048xf32, #tpu.memory_space<vmem>>, %arg2: memref<1x2048xf32, #tpu.memory_space<vmem>>) attributes {dimension_semantics = [#tpu.dimension_semantics<parallel>], iteration_bounds = array<i64: 1>, scalar_prefetch = 0 : i64, scratch_operands = 0 : i64, tpu.core_type = #tpu.core_type<tc>, window_params = [{transform_indices = @transform_0, window_bounds = array<i64: 1, 2048>}, {transform_indices = @transform_1, window_bounds = array<i64: 1, 2048>}]} {
    %c0 = arith.constant 0 : index
    %c0_0 = arith.constant 0 : index
    %0 = vector.load %arg1[%c0, %c0_0] : memref<1x2048xf32, #tpu.memory_space<vmem>>, vector<1x2048xf32>
    %cst = arith.constant 2.000000e+00 : f32
    %1 = vector.broadcast %cst : f32 to vector<1x2048xf32>
    %2 = arith.addf %0, %1 : vector<1x2048xf32>
    %cst_1 = arith.constant 3.000000e+00 : f32
    %3 = vector.broadcast %cst_1 : f32 to vector<1x2048xf32>
    %4 = arith.mulf %2, %3 : vector<1x2048xf32>
    %cst_2 = arith.constant 5.000000e-01 : f32
    %5 = vector.broadcast %cst_2 : f32 to vector<1x2048xf32>
    %6 = arith.mulf %4, %5 : vector<1x2048xf32>
    %c0_3 = arith.constant 0 : index
    %c0_4 = arith.constant 0 : index
    %7 = vector.load %arg2[%c0_3, %c0_4] : memref<1x2048xf32, #tpu.memory_space<vmem>>, vector<1x2048xf32>
    tpu.vector_store %arg2[%c0_3, %c0_4], %6 {strides = array<i32>} : memref<1x2048xf32, #tpu.memory_space<vmem>>, vector<1x2048xf32>,
    return
  }
  func.func @transform_0(%arg0: i32) -> (i32, i32) {
    %c0_i32 = arith.constant 0 : i32
    %c0_i32_0 = arith.constant 0 : i32
    return %arg0, %c0_i32 : i32, i32
  }
  func.func @transform_1(%arg0: i32) -> (i32, i32) {
    %c0_i32 = arith.constant 0 : i32
    %c0_i32_0 = arith.constant 0 : i32
    return %arg0, %c0_i32 : i32, i32
  }
}

</mosaic_0001>

<bundles_post_ra>
// kernel: tpu_custom_call.1
= control target key start
LH: loop header
LB: loop body
LE: loop exit
PB: predicated region body
PF: predicated region fallthrough
CT: control target
= control target key end

     0   :  { %6 = vsyncpa [#allocation3], 0  ;;  %s110_s0 = inlined_call_operand.hbm [shape: f32[1,2048], index: 0, kind: input, shape index: {}]   ;;  %s111_s1 = inlined_call_operand.hbm [shape: f32[1,2048], index: 1, kind: output, shape index: {}]  }
   0x1   :  { %7 = vsyncpa [#allocation4], 0  ;;  %s92_s6 = smov [#allocation2]  }
   0x2   :  { %s14_s7 = sshll.u32 %s92_s6, 4  ;;  %s15_s7 = int_to_ptr.vmem [resolvable:$true] %s14_s7 }
   0x3   :  { %s56_s8 = scalar_lea.vmem %s15_s7, 256  ;;  %p61_p1 = scmp.lt.s32.totalorder %s15_s7, %s15_s7 }
   0x4   :  { %p57_p0 = scmp.ne.s32.totalorder %s15_s7, %s56_s8  ;;  %p62_p2 = scmp.lt.s32.totalorder %s56_s8, %s56_s8 }
   0x6   :  { %p63_p3 = por %p62_p2, %p61_p1 }
   0x8   :  { %p64_p4 = pnand %p63_p3, %p57_p0 }
   0xa   :  { %67 = shalt.err (!%p64_p4)
}
   0xb   :  { %17 = dma.hbm_to_vmem [thread:$0]  %s110_s0, 256, %s15_s7, [#allocation3]  }
   0xc   :  { %88 = dma.done.wait [#allocation3], 256  }
   0xd   :  { %89 = vsyncadd [#allocation3], 4294967040  ;;  %v21_v0 = vld [vmem:[#allocation2] sm:$0xff]  ;;  %v22_v1 = vld [vmem:[#allocation2 + $0x8] sm:$0xff]  ;;  %s93_s11 = smov [#allocation5]  }
   0xe   :  { %v23_v2 = vadd.f32 2.0, %v21_v0  ;;  %v24_v3 = vadd.f32 2.0, %v22_v1  ;;  %s37_s12 = sshll.u32 %s93_s11, 4  ;;  %s38_s12 = int_to_ptr.vmem [resolvable:$true] %s37_s12 }
   0xf   :  { %s68_s13 = scalar_lea.vmem %s38_s12, 256  ;;  %p73_p6 = scmp.lt.s32.totalorder %s38_s12, %s38_s12 }
  0x10   :  { %v25_v4 = vmul.f32 3.0, %v23_v2  ;;  %v26_v5 = vmul.f32 3.0, %v24_v3  ;;  %p69_p5 = scmp.ne.s32.totalorder %s38_s12, %s68_s13  ;;  %p74_p7 = scmp.lt.s32.totalorder %s68_s13, %s68_s13 }
  0x12   :  { %v27_v6 = vmul.f32 0.5, %v25_v4  ;;  %v28_v7 = vmul.f32 0.5, %v26_v5  ;;  %p75_p8 = por %p74_p7, %p73_p6 }
  0x14   :  { %29 = vst [vmem:[#allocation5] sm:$0xff] %v27_v6  ;;  %30 = vst [vmem:[#allocation5 + $0x8] sm:$0xff] %v28_v7  ;;  %p76_p9 = pnand %p75_p8, %p69_p5 }
  0x16   :  { %79 = shalt.err (!%p76_p9)
}
  0x17   :  { %40 = dma.vmem_to_hbm [thread:$0]  %s38_s12, 256, %s111_s1, [#allocation4]  }
  0x18   :  { %90 = dma.done.wait [#allocation4], 256  }
  0x19   :  { %91 = vsyncadd [#allocation4], 4294967040 }
  0x1a   :  { %44 = vsyncpa [#allocation3], 1 }
  0x1b   :  { %45 = vsyncpa [#allocation4], 1 }

</bundles_post_ra>
